<compile_context>
chip_gen: v7x
topology: tpu7x:2x2x1
jax: 0.10.0
libtpu: 0.0.40
codegen_flags: <defaults>
</compile_context>

<pallas_src>
import jax
import jax.numpy as jnp
from jax.experimental import pallas as pl
from jax.experimental.pallas import tpu as pltpu


def _normalize_kernel(x_ref, scale_ref, bias_ref, o_ref):
    # x_ref:     (tile_r, tile_c) tile of the flattened image
    # scale_ref: (tile_r, 1)      per-row 1/std      (f32)
    # bias_ref:  (tile_r, 1)      per-row -mean/std  (f32)
    # Pure VPU work: one mul + one add per element, params broadcast over lanes.
    y = x_ref[...].astype(jnp.float32) * scale_ref[...] + bias_ref[...]
    o_ref[...] = y.astype(o_ref.dtype)


def _round_down(x, m):
    return (x // m) * m


def _round_up(x, m):
    return ((x + m - 1) // m) * m


def normalization_forward(img, mean, std):
    """img: (N, C, H, W); mean/std: (C,). Returns (N, C, H, W) in img.dtype."""
    N, C, H, W = img.shape
    R, L = N * C, H * W

    itemsize = jnp.dtype(img.dtype).itemsize
    row_mult = {4: 8, 2: 16, 1: 32}.get(itemsize, 8)  # sublane multiple per dtype

    # Lane-dense 2-D view: rows = (n, c) pairs, columns = spatial positions.
    x2d = img.reshape(R, L)

    # Precompute affine params once in f32 (O(C), negligible).
    mean_f32 = mean.astype(jnp.float32)
    std_f32 = std.astype(jnp.float32)
    scale = 1.0 / std_f32            # (C,)
    bias = -mean_f32 / std_f32       # (C,)
    # Row r corresponds to channel r % C -> tile across the batch dimension.
    scale_rows = jnp.tile(scale, N).reshape(R, 1)
    bias_rows = jnp.tile(bias, N).reshape(R, 1)

    # Generation-aware sizing.
    try:
        vmem_capacity = int(pltpu.get_tpu_info().vmem_capacity_bytes)
    except Exception:  # no TPU info available -> conservative default (v7x)
        vmem_capacity = 64 << 20
    # ~8 MB per block buffer; in+out double buffers => <= ~32 MB live.
    target_block_bytes = min(8 << 20, max(2 << 20, vmem_capacity // 8))
    vmem_limit = min((vmem_capacity * 3) // 4, 96 << 20)

    row_bytes = L * itemsize
    if row_mult * row_bytes <= target_block_bytes:
        # ---- full-row contiguous blocks, 1-D grid over rows -----------------
        tile_r = _round_down(target_block_bytes // row_bytes, row_mult)
        tile_r = max(row_mult, min(tile_r, _round_up(R, row_mult)))
        if tile_r >= R:
            tile_r = R
            # Guarantee >= 2 parallel grid steps when legally splittable so
            # both TensorCores on v7x get work (no-op on 1-TC chips).
            half = _round_up((R + 1) // 2, row_mult)
            if half < R:
                tile_r = half
        grid = (pl.cdiv(R, tile_r),)
        in_specs = [
            pl.BlockSpec((tile_r, L), lambda i: (i, 0)),   # image rows
            pl.BlockSpec((tile_r, 1), lambda i: (i, 0)),   # scale
            pl.BlockSpec((tile_r, 1), lambda i: (i, 0)),   # bias
        ]
        out_spec = pl.BlockSpec((tile_r, L), lambda i: (i, 0))
        dim_sem = ("parallel",)
    else:
        # ---- fallback: rows x columns grid (rows outer, cols inner) ---------
        tile_r = R if R < 256 else 256
        tile_c = max(128, _round_down(target_block_bytes // (tile_r * itemsize), 128))
        if tile_c >= L:
            tile_c = L
        grid = (pl.cdiv(R, tile_r), pl.cdiv(L, tile_c))
        in_specs = [
            pl.BlockSpec((tile_r, tile_c), lambda i, j: (i, j)),
            pl.BlockSpec((tile_r, 1), lambda i, j: (i, 0)),
            pl.BlockSpec((tile_r, 1), lambda i, j: (i, 0)),
        ]
        out_spec = pl.BlockSpec((tile_r, tile_c), lambda i, j: (i, j))
        dim_sem = ("parallel", "parallel")

    out2d = pl.pallas_call(
        _normalize_kernel,
        out_shape=jax.ShapeDtypeStruct((R, L), img.dtype),
        grid_spec=pltpu.PrefetchScalarGridSpec(
            num_scalar_prefetch=0,
            grid=grid,
            in_specs=in_specs,
            out_specs=out_spec,
        ),
        compiler_params=pltpu.CompilerParams(
            dimension_semantics=dim_sem,
            vmem_limit_bytes=vmem_limit,
        ),
    )(x2d, scale_rows, bias_rows)

    return out2d.reshape(N, C, H, W)


if __name__ == "__main__":
    key = jax.random.PRNGKey(0)
    (k_img,) = jax.random.split(key, 1)

    N, C, H, W = 2, 4, 16, 16
    img = jax.random.uniform(k_img, (N, C, H, W), dtype=jnp.float32)

    # Deterministic "parameters" (the module takes mean/std at construction).
    mean = jnp.linspace(0.1, 0.4, C).astype(jnp.float32)   # per-channel mean
    std = jnp.linspace(0.5, 0.8, C).astype(jnp.float32)    # per-channel std

    out = normalization_forward(img, mean, std)
    out = jax.block_until_ready(out)

    # Reference check in plain JAX (mirrors PyTorch broadcasting semantics).
    ref = (img - mean.reshape(1, C, 1, 1)) / std.reshape(1, C, 1, 1)
    assert out.shape == (N, C, H, W)
    assert jnp.allclose(out, ref, atol=1e-5, rtol=1e-5)

    print("KERNEL_OK")
</pallas_src>

<mosaic_0001>
module attributes {stable_mosaic.version = 11 : i64} {
  func.func @_normalize_kernel(%arg0: i32, %arg1: memref<8x256xf32, #tpu.memory_space<vmem>>, %arg2: memref<8x1xf32, #tpu.memory_space<vmem>>, %arg3: memref<8x1xf32, #tpu.memory_space<vmem>>, %arg4: memref<8x256xf32, #tpu.memory_space<vmem>>) attributes {dimension_semantics = [#tpu.dimension_semantics<parallel>], iteration_bounds = array<i64: 1>, scalar_prefetch = 0 : i64, scratch_operands = 0 : i64, tpu.core_type = #tpu.core_type<tc>, window_params = [{transform_indices = @transform_0, window_bounds = array<i64: 8, 256>}, {transform_indices = @transform_1, window_bounds = array<i64: 8, 1>}, {transform_indices = @transform_2, window_bounds = array<i64: 8, 1>}, {transform_indices = @transform_3, window_bounds = array<i64: 8, 256>}]} {
    %c0 = arith.constant 0 : index
    %c0_0 = arith.constant 0 : index
    %0 = vector.load %arg1[%c0, %c0_0] : memref<8x256xf32, #tpu.memory_space<vmem>>, vector<8x256xf32>
    %c0_1 = arith.constant 0 : index
    %c0_2 = arith.constant 0 : index
    %1 = vector.load %arg2[%c0_1, %c0_2] : memref<8x1xf32, #tpu.memory_space<vmem>>, vector<8x1xf32>
    %2 = vector.broadcast %1 : vector<8x1xf32> to vector<8x256xf32>
    %3 = arith.mulf %0, %2 : vector<8x256xf32>
    %c0_3 = arith.constant 0 : index
    %c0_4 = arith.constant 0 : index
    %4 = vector.load %arg3[%c0_3, %c0_4] : memref<8x1xf32, #tpu.memory_space<vmem>>, vector<8x1xf32>
    %5 = vector.broadcast %4 : vector<8x1xf32> to vector<8x256xf32>
    %6 = arith.addf %3, %5 : vector<8x256xf32>
    %c0_5 = arith.constant 0 : index
    %c0_6 = arith.constant 0 : index
    %7 = vector.load %arg4[%c0_5, %c0_6] : memref<8x256xf32, #tpu.memory_space<vmem>>, vector<8x256xf32>
    tpu.vector_store %arg4[%c0_5, %c0_6], %6 {strides = array<i32>} : memref<8x256xf32, #tpu.memory_space<vmem>>, vector<8x256xf32>,
    return
  }
  func.func @transform_0(%arg0: i32) -> (i32, i32) {
    %c0_i32 = arith.constant 0 : i32
    %c0_i32_0 = arith.constant 0 : i32
    return %arg0, %c0_i32 : i32, i32
  }
  func.func @transform_1(%arg0: i32) -> (i32, i32) {
    %c0_i32 = arith.constant 0 : i32
    %c0_i32_0 = arith.constant 0 : i32
    return %arg0, %c0_i32 : i32, i32
  }
  func.func @transform_2(%arg0: i32) -> (i32, i32) {
    %c0_i32 = arith.constant 0 : i32
    %c0_i32_0 = arith.constant 0 : i32
    return %arg0, %c0_i32 : i32, i32
  }
  func.func @transform_3(%arg0: i32) -> (i32, i32) {
    %c0_i32 = arith.constant 0 : i32
    %c0_i32_0 = arith.constant 0 : i32
    return %arg0, %c0_i32 : i32, i32
  }
}

</mosaic_0001>

<bundles_post_ra>
// kernel: tpu_custom_call.1
= control target key start
LH: loop header
LB: loop body
LE: loop exit
PB: predicated region body
PF: predicated region fallthrough
CT: control target
= control target key end

     0   :  { %s122_s0 = inlined_call_operand.vmem [shape: f32[8,256], index: 0, kind: input, shape index: {}]   ;;  %s123_s1 = inlined_call_operand.vmem [shape: f32[8,1], index: 1, kind: input, shape index: {}]   ;;  %s124_s2 = inlined_call_operand.vmem [shape: f32[8,1], index: 2, kind: input, shape index: {}]   ;;  %s125_s3 = inlined_call_operand.hbm [shape: f32[8,256], index: 3, kind: output, shape index: {}]  }
   0x1   :  { %v17_v0 = vld [vmem:[%s123_s1] sm:$0xff] }
   0x2   :  { %8 = vsyncpa [#allocation3], 0  ;;  %v76_v1 = vmov 0   ;;  %v25_v2 = vld [vmem:[%s124_s2] sm:$0xff]  ;;  %v16_v5 = vld [vmem:[%s122_s0 + $0x8] sm:$0xff]  ;;  %s77_s20 = smov [#allocation2]  }
   0x3   :  { %51 = vset.pattern.permute.xlu0 %v76_v1  ;;  %v15_v4 = vld [vmem:[%s122_s0] sm:$0xff]  ;;  %s41_s1 = sshll.u32 %s77_s20, 4  ;;  %s42_s1 = int_to_ptr.vmem [resolvable:$true] %s41_s1 }
   0x4   :  { %20 = vperm.xlu0 %51, %v17_v0   ;;  %s52_s2 = scalar_lea.vmem %s42_s1, 256  ;;  %p57_p1 = scmp.lt.s32.totalorder %s42_s1, %s42_s1 }
   0x5   :  { %p53_p0 = scmp.ne.s32.totalorder %s42_s1, %s52_s2  ;;  %p58_p2 = scmp.lt.s32.totalorder %s52_s2, %s52_s2 }
   0x7   :  { %p59_p3 = por %p58_p2, %p57_p1 }
   0x8   :  { %28 = vperm.xlu0 %51, %v25_v2  }
   0x9   :  { %p60_p4 = pnand %p59_p3, %p53_p0 }
  0x83   :  { %v21_v3 = vpop.permute.xlu0 %20 }
  0x84   :  { %v23_v6 = vmul.f32 %v21_v3, %v15_v4  ;;  %v24_v7 = vmul.f32 %v21_v3, %v16_v5 }
  0x87   :  { %v29_v8 = vpop.permute.xlu0 %28 }
  0x88   :  { %v31_v9 = vadd.f32 %v29_v8, %v23_v6  ;;  %v32_v10 = vadd.f32 %v29_v8, %v24_v7 }
  0x8a   :  { %33 = vst [vmem:[#allocation2] sm:$0xff] %v31_v9  ;;  %34 = vst [vmem:[#allocation2 + $0x8] sm:$0xff] %v32_v10 }
  0x8b   :  { %63 = shalt.err (!%p60_p4)
}
  0x8c   :  { %s64_s0 = scalar_lea.hbm %s125_s3, 256 }
  0x8d   :  { %p65_p5 = scmp.ne.s32.totalorder %s125_s3, %s64_s0  ;;  %p68_p6 = scmp.lt.u32.totalorder %s64_s0, %s125_s3 }
  0x8f   :  { %p70_p7 = pnand %p68_p6, %p65_p5 }
  0x91   :  { %73 = shalt.err (!%p70_p7)
}
  0x92   :  { %44 = dma.vmem_to_hbm [thread:$0]  %s42_s1, 256, %s125_s3, [#allocation3]  }
  0x93   :  { %74 = dma.done.wait [#allocation3], 256  }
  0x94   :  { %75 = vsyncadd [#allocation3], 4294967040 }
  0x95   :  { %48 = vsyncpa [#allocation3], 1 }

</bundles_post_ra>
